<compile_context>
chip_gen: v7x
topology: tpu7x:2x2x1
jax: 0.10.0
libtpu: 0.0.40
codegen_flags: <defaults>
</compile_context>

<pallas_src>
import jax
import jax.numpy as jnp
from jax import lax
from jax.experimental import pallas as pl
from jax.experimental.pallas import tpu as pltpu


# --------------------------------------------------------------------------
# Kernels
# --------------------------------------------------------------------------
def _stats_kernel(x_ref, sum_ref, sq_ref):
    """Per-tile partial sum / sum-of-squares per channel (one-pass BN stats)."""
    NT, H, W, C = x_ref.shape
    x2 = x_ref[...].reshape(NT * H * W, C)
    sum_ref[...] = jnp.sum(x2, axis=0, keepdims=True).reshape(1, 1, C)
    sq_ref[...] = jnp.sum(x2 * x2, axis=0, keepdims=True).reshape(1, 1, C)


def _bn_relu_conv3x3(x2, scale, shift, w_ref, pad_ref, col_ref):
    """h = relu(x*scale+shift); return 3x3 conv(h) as (R, C) f32 (no bias).

    Uses a zero-padded VMEM scratch (halo-only memset) + bf16 im2col scratch
    and ONE MXU matmul with contraction K = 9*C.
    """
    NT, HP, WP, C = pad_ref.shape
    H, W = HP - 2, WP - 2
    R = NT * H * W

    h = jnp.maximum(x2 * scale + shift, 0.0)

    # Zero only the 1-pixel halo; the interior is fully overwritten below.
    zr = jnp.zeros((NT, 1, WP, C), jnp.float32)
    zc = jnp.zeros((NT, HP, 1, C), jnp.float32)
    pad_ref[:, 0:1, :, :] = zr
    pad_ref[:, H + 1:H + 2, :, :] = zr
    pad_ref[:, :, 0:1, :] = zc
    pad_ref[:, :, W + 1:W + 2, :] = zc
    pad_ref[:, 1:H + 1, 1:W + 1, :] = h.reshape(NT, H, W, C)

    # im2col: (R, 9*C) bf16, lane-aligned column writes.
    for t in range(9):
        dy, dx = divmod(t, 3)
        patch = pad_ref[:, dy:dy + H, dx:dx + W, :].reshape(R, C)
        col_ref[:, t * C:(t + 1) * C] = patch.astype(jnp.bfloat16)

    # Single bf16 MXU matmul, f32 accumulation.
    return jnp.dot(col_ref[...], w_ref[...], preferred_element_type=jnp.float32)


def _bn_conv1_kernel(x_ref, scale_ref, shift_ref, w_ref, b_ref,
                     y_ref, sum_ref, sq_ref, pad_ref, col_ref):
    """y1 = conv1(relu(bn1(x))); also emits per-tile BN2 partial statistics."""
    NT, H, W, C = x_ref.shape
    R = NT * H * W
    x2 = x_ref[...].reshape(R, C)
    acc = _bn_relu_conv3x3(x2, scale_ref[...], shift_ref[...],
                           w_ref, pad_ref, col_ref)
    y = acc + b_ref[...]                       # bias added once, at the end
    y_ref[...] = y.reshape(NT, H, W, C)
    sum_ref[...] = jnp.sum(y, axis=0, keepdims=True).reshape(1, 1, C)
    sq_ref[...] = jnp.sum(y * y, axis=0, keepdims=True).reshape(1, 1, C)


def _bn_conv2_res_kernel(y1_ref, x_ref, scale_ref, shift_ref, w_ref, b_ref,
                         o_ref, pad_ref, col_ref):
    """out = conv2(relu(bn2(y1))) + x  (residual fused into the epilogue)."""
    NT, H, W, C = y1_ref.shape
    R = NT * H * W
    y2 = y1_ref[...].reshape(R, C)
    acc = _bn_relu_conv3x3(y2, scale_ref[...], shift_ref[...],
                           w_ref, pad_ref, col_ref)
    out = acc + b_ref[...] + x_ref[...].reshape(R, C)
    o_ref[...] = out.reshape(NT, H, W, C)


# --------------------------------------------------------------------------
# Wrappers
# --------------------------------------------------------------------------
def preact_resblock_nhwc(x, params, *, nt=1):
    """NHWC in / NHWC out.  Use this directly when chaining blocks."""
    N, H, W, C = x.shape
    assert N % nt == 0, "batch must be divisible by the batch tile"
    num_tiles = N // nt
    count = jnp.float32(N * H * W)
    eps = jnp.float32(1e-5)

    x = x.astype(jnp.float32)
    # HWIO (3,3,Cin,Cout) -> (9*Cin, Cout) matching im2col tap order; bf16 MXU.
    w1 = params["w1"].astype(jnp.bfloat16).reshape(9 * C, C)
    w2 = params["w2"].astype(jnp.bfloat16).reshape(9 * C, C)
    b1 = params["b1"].reshape(1, C).astype(jnp.float32)
    b2 = params["b2"].reshape(1, C).astype(jnp.float32)

    cparams = pltpu.CompilerParams(
        dimension_semantics=("parallel",),
        vmem_limit_bytes=32 * 1024 * 1024,
    )
    tile_spec = pl.BlockSpec((nt, H, W, C), lambda i: (i, 0, 0, 0))
    vec_spec = pl.BlockSpec((1, C), lambda i: (0, 0))
    w_spec = pl.BlockSpec((9 * C, C), lambda i: (0, 0))
    stat_spec = pl.BlockSpec((1, 1, C), lambda i: (i, 0, 0))
    stat_shape = jax.ShapeDtypeStruct((num_tiles, 1, C), jnp.float32)
    scratch = [
        pltpu.VMEM((nt, H + 2, W + 2, C), jnp.float32),   # zero-padded act
        pltpu.VMEM((nt * H * W, 9 * C), jnp.bfloat16),    # im2col
    ]

    def bn_coeffs(sum_p, sq_p, gamma, beta):
        mean = jnp.sum(sum_p, axis=(0, 1)) / count
        var = jnp.sum(sq_p, axis=(0, 1)) / count - mean * mean   # biased var
        inv = gamma.astype(jnp.float32) * lax.rsqrt(var + eps)
        scale = inv.reshape(1, C)
        shift = (beta.astype(jnp.float32) - mean * inv).reshape(1, C)
        return scale, shift

    # ---- pass 1: BN1 batch statistics of x (per-tile partials) ----
    s1, q1 = pl.pallas_call(
        _stats_kernel,
        grid=(num_tiles,),
        in_specs=[tile_spec],
        out_specs=[stat_spec, stat_spec],
        out_shape=[stat_shape, stat_shape],
        compiler_params=cparams,
    )(x)
    scale1, shift1 = bn_coeffs(s1, q1, params["gamma1"], params["beta1"])

    # ---- pass 2: y1 = conv1(relu(bn1(x))), fused BN2 partial stats ----
    y1, s2, q2 = pl.pallas_call(
        _bn_conv1_kernel,
        grid=(num_tiles,),
        in_specs=[tile_spec, vec_spec, vec_spec, w_spec, vec_spec],
        out_specs=[tile_spec, stat_spec, stat_spec],
        out_shape=[jax.ShapeDtypeStruct((N, H, W, C), jnp.float32),
                   stat_shape, stat_shape],
        scratch_shapes=scratch,
        compiler_params=cparams,
    )(x, scale1, shift1, w1, b1)
    scale2, shift2 = bn_coeffs(s2, q2, params["gamma2"], params["beta2"])

    # ---- pass 3: out = conv2(relu(bn2(y1))) + x ----
    out = pl.pallas_call(
        _bn_conv2_res_kernel,
        grid=(num_tiles,),
        in_specs=[tile_spec, tile_spec, vec_spec, vec_spec, w_spec, vec_spec],
        out_specs=tile_spec,
        out_shape=jax.ShapeDtypeStruct((N, H, W, C), jnp.float32),
        scratch_shapes=scratch,
        compiler_params=cparams,
    )(y1, x, scale2, shift2, w2, b2)
    return out


def preact_resblock(x_nchw, params, *, nt=1):
    """NCHW in / NCHW out (PyTorch convention).

    When chaining blocks inside a full PreActResNet, keep activations NHWC
    end-to-end and call preact_resblock_nhwc directly — these transposes are
    pure layout plumbing for the PyTorch-parity test.
    """
    x = jnp.transpose(x_nchw, (0, 2, 3, 1))
    out = preact_resblock_nhwc(x, params, nt=nt)
    return jnp.transpose(out, (0, 3, 1, 2))


# ----------------------------- pure-JAX reference -----------------------------
def _reference(x_nchw, params):
    x = jnp.transpose(x_nchw, (0, 2, 3, 1)).astype(jnp.float32)
    eps = 1e-5

    def bn(v, g, b):
        m = jnp.mean(v, axis=(0, 1, 2), keepdims=True)
        var = jnp.mean((v - m) ** 2, axis=(0, 1, 2), keepdims=True)
        return (v - m) / jnp.sqrt(var + eps) * g.reshape(1, 1, 1, -1) \
            + b.reshape(1, 1, 1, -1)

    def conv(v, w_hwio, b):
        y = lax.conv_general_dilated(
            v, w_hwio, window_strides=(1, 1), padding=((1, 1), (1, 1)),
            dimension_numbers=("NHWC", "HWIO", "NHWC"))
        return y + b.reshape(1, 1, 1, -1)

    h = jax.nn.relu(bn(x, params["gamma1"], params["beta1"]))
    y = conv(h, params["w1"], params["b1"])
    h = jax.nn.relu(bn(y, params["gamma2"], params["beta2"]))
    y = conv(h, params["w2"], params["b2"])
    return jnp.transpose(y + x, (0, 3, 1, 2))


# ----------------------------- deterministic init -----------------------------
def _init_params(key, channel):
    k1, k2, k3, k4, kx = jax.random.split(key, 5)
    fan_in = channel * 3 * 3
    std = (2.0 / fan_in) ** 0.5                  # kaiming_normal, fan_in, relu
    bound = 1.0 / (fan_in ** 0.5)                # PyTorch default conv bias init

    w1_oihw = std * jax.random.normal(k1, (channel, channel, 3, 3), jnp.float32)
    w2_oihw = std * jax.random.normal(k2, (channel, channel, 3, 3), jnp.float32)
    params = {
        # HWIO layout for the kernel / lax.conv
        "w1": jnp.transpose(w1_oihw, (2, 3, 1, 0)),
        "w2": jnp.transpose(w2_oihw, (2, 3, 1, 0)),
        "b1": jax.random.uniform(k3, (channel,), jnp.float32, -bound, bound),
        "b2": jax.random.uniform(k4, (channel,), jnp.float32, -bound, bound),
        "gamma1": jnp.ones((channel,), jnp.float32),
        "beta1": jnp.zeros((channel,), jnp.float32),
        "gamma2": jnp.ones((channel,), jnp.float32),
        "beta2": jnp.zeros((channel,), jnp.float32),
    }
    return params, kx


if __name__ == "__main__":
    # Small but hardware-aligned block shape (lane-dense C=128, W multiple of 8).
    N, C, H, W = 4, 128, 16, 16
    params, kx = _init_params(jax.random.PRNGKey(0), C)
    x = jax.random.normal(kx, (N, C, H, W), jnp.float32)            # NCHW input

    out = jax.block_until_ready(preact_resblock(x, params, nt=1))
    ref = jax.block_until_ready(_reference(x, params))

    max_err = float(jnp.max(jnp.abs(out - ref)))
    assert out.shape == (N, C, H, W)
    # Conv matmuls run in bf16 on the MXU (f32 accumulation) -> looser tolerance
    # than a pure-f32 comparison.
    assert max_err < 2e-2, f"mismatch vs reference: {max_err}"

    print("KERNEL_OK")
</pallas_src>

<mosaic_0001>
module attributes {stable_mosaic.version = 11 : i64} {
  func.func @_stats_kernel(%arg0: i32, %arg1: memref<1x16x16x128xf32, #tpu.memory_space<vmem>>, %arg2: memref<1x1x128xf32, #tpu.memory_space<vmem>>, %arg3: memref<1x1x128xf32, #tpu.memory_space<vmem>>) attributes {dimension_semantics = [#tpu.dimension_semantics<parallel>], iteration_bounds = array<i64: 4>, scalar_prefetch = 0 : i64, scratch_operands = 0 : i64, tpu.core_type = #tpu.core_type<tc>, window_params = [{transform_indices = @transform_0, window_bounds = array<i64: 1, 16, 16, 128>}, {transform_indices = @transform_1, window_bounds = array<i64: 1, 1, 128>}, {transform_indices = @transform_2, window_bounds = array<i64: 1, 1, 128>}]} {
    %c0 = arith.constant 0 : index
    %c0_0 = arith.constant 0 : index
    %c0_1 = arith.constant 0 : index
    %c0_2 = arith.constant 0 : index
    %0 = vector.load %arg1[%c0, %c0_0, %c0_1, %c0_2] : memref<1x16x16x128xf32, #tpu.memory_space<vmem>>, vector<1x16x16x128xf32>
    %1 = vector.shape_cast %0 : vector<1x16x16x128xf32> to vector<256x128xf32>
    %cst = arith.constant dense<0.000000e+00> : vector<128xf32>
    %2 = vector.multi_reduction <add>, %1, %cst [0] : vector<256x128xf32> to vector<128xf32>
    %3 = vector.shape_cast %2 : vector<128xf32> to vector<1x128xf32>
    %4 = vector.shape_cast %3 : vector<1x128xf32> to vector<1x1x128xf32>
    %c0_3 = arith.constant 0 : index
    %c0_4 = arith.constant 0 : index
    %c0_5 = arith.constant 0 : index
    %5 = vector.load %arg2[%c0_3, %c0_4, %c0_5] : memref<1x1x128xf32, #tpu.memory_space<vmem>>, vector<1x1x128xf32>
    tpu.vector_store %arg2[%c0_3, %c0_4, %c0_5], %4 {strides = array<i32>} : memref<1x1x128xf32, #tpu.memory_space<vmem>>, vector<1x1x128xf32>,
    %6 = arith.mulf %1, %1 : vector<256x128xf32>
    %cst_6 = arith.constant dense<0.000000e+00> : vector<128xf32>
    %7 = vector.multi_reduction <add>, %6, %cst_6 [0] : vector<256x128xf32> to vector<128xf32>
    %8 = vector.shape_cast %7 : vector<128xf32> to vector<1x128xf32>
    %9 = vector.shape_cast %8 : vector<1x128xf32> to vector<1x1x128xf32>
    %c0_7 = arith.constant 0 : index
    %c0_8 = arith.constant 0 : index
    %c0_9 = arith.constant 0 : index
    %10 = vector.load %arg3[%c0_7, %c0_8, %c0_9] : memref<1x1x128xf32, #tpu.memory_space<vmem>>, vector<1x1x128xf32>
    tpu.vector_store %arg3[%c0_7, %c0_8, %c0_9], %9 {strides = array<i32>} : memref<1x1x128xf32, #tpu.memory_space<vmem>>, vector<1x1x128xf32>,
    return
  }
  func.func @transform_0(%arg0: i32) -> (i32, i32, i32, i32) {
    %c0_i32 = arith.constant 0 : i32
    %c0_i32_0 = arith.constant 0 : i32
    %c0_i32_1 = arith.constant 0 : i32
    %c0_i32_2 = arith.constant 0 : i32
    return %arg0, %c0_i32, %c0_i32_0, %c0_i32_1 : i32, i32, i32, i32
  }
  func.func @transform_1(%arg0: i32) -> (i32, i32, i32) {
    %c0_i32 = arith.constant 0 : i32
    %c0_i32_0 = arith.constant 0 : i32
    %c0_i32_1 = arith.constant 0 : i32
    return %arg0, %c0_i32, %c0_i32_0 : i32, i32, i32
  }
  func.func @transform_2(%arg0: i32) -> (i32, i32, i32) {
    %c0_i32 = arith.constant 0 : i32
    %c0_i32_0 = arith.constant 0 : i32
    %c0_i32_1 = arith.constant 0 : i32
    return %arg0, %c0_i32, %c0_i32_0 : i32, i32, i32
  }
}

</mosaic_0001>

<bundles_post_ra>
// kernel: tpu_custom_call.1
= control target key start
LH: loop header
LB: loop body
LE: loop exit
PB: predicated region body
PF: predicated region fallthrough
CT: control target
= control target key end

     0   :  { %8 = vsyncpa [#allocation3], 0  ;;  %s878_s0 = inlined_call_operand.hbm [shape: f32[4,16,16,128], index: 0, kind: input, shape index: {}]   ;;  %s879_s1 = inlined_call_operand.hbm [shape: f32[4,1,128], index: 1, kind: output, shape index: {0}]   ;;  %s880_s2 = inlined_call_operand.hbm [shape: f32[4,1,128], index: 2, kind: output, shape index: {1}]  }
   0x1   :  { %10 = vsyncpa [#allocation3 + $0x1], 0 }
   0x2   :  { %11 = vsyncpa [#allocation4], 0 }
   0x3   :  { %13 = vsyncpa [#allocation4 + $0x1], 0 }
   0x4   :  { %14 = vsyncpa [#allocation7], 0 }
   0x5   :  { %16 = vsyncpa [#allocation7 + $0x1], 0  ;;  %s651_s9 = smov 0   ;;  %s653_s10 = smov 0  }
   0x6   :  { %s655_s11 = smov 0   ;;  %s657_s12 = smov 0  }
   0x7 LB: > { %s672_s13 = sadd.s32 4294967295, %s629_s12   ;;  %s435_s14 = sadd.s32 4294967294, %s629_s12   ;;  %s629_s12 = sphi %s657_s12, %s892_s12   ;;  %s625_s11 = sphi %s655_s11, %s891_s11   ;;  %s621_s10 = sphi %s653_s10, %s890_s10   ;;  %s617_s9 = sphi %s651_s9, %s889_s9  }
   0x8   : > { %s676_s15 = sadd.s32 1, %s629_s12   ;;  %s29_s16 = sadd.s32 1, %s625_s11 }
   0x9   : > { %s26_s17 = ssub.s32 %s629_s12, %s676_s15  ;;  %p36_p0 = scmp.ne.s32.totalorder %s625_s11, %s621_s10 }
   0xa   : > { %p27_p1 = scmp.eq.s32.totalorder %s26_s17, 0  ;;  %p37_p2 = scmp.eq.s32.totalorder %s629_s12, 0 }
   0xb   : > { %p42_p3 = scmp.ne.s32.totalorder %s621_s10, %s617_s9  ;;  %p43_p4 = scmp.eq.s32.totalorder %s672_s13, 0 }
   0xc   : > { %s688_s18 = scalar_select %p27_p1, %s625_s11, %s29_s16  }
   0xd   : > { %p690_p5 = por %p37_p2, %p36_p0  ;;  %p694_p6 = por %p43_p4, %p42_p3 }
   0xe   : > { %p66_p7 = scmp.eq.s32.totalorder %s672_s13, 3  ;;  %p72_p8 = scmp.eq.s32.totalorder %s435_s14, 3 }
   0xf   : > { %p465_p9 = scmp.lt.s32.totalorder %s629_s12, 4  ;;  %s118_s23 = sand.u32 1, %s625_s11  }
  0x10   : > { %p700_p10 = por %p66_p7, %p36_p0  ;;  %p704_p11 = por %p72_p8, %p42_p3 }
  0x11   : > { %s447_s24 = sshll.u32 %s629_s12, 12  ;;  %s438_s25 = sshll.u32 %s118_s23, 8 }
  0x12   : > { %s884_s21 = scalar_select %p700_p10, 1, 0 }
  0x13   : > { %s885_s22 = scalar_select %p704_p11, 1, 0 }
  0x14   : > { %s713_s28 = scalar_lea.hbm %s878_s0, %s447_s24  ;;  %s122_s29 = scalar_lea.vmem [#allocation2], %s438_s25 }
  0x15   : > { %s129_s30 = sshll.u32 %s122_s29, 4  ;;  %p717_p12 = pnand %p465_p9, %p690_p5  ;;  %s721_s30 = int_to_ptr.vmem [resolvable:$true] %s129_s30 }
  0x16   : > { %s723_s4 = scalar_lea.sflag [#allocation3], %s118_s23  ;;  %s501_s5 = scalar_lea.hbm %s713_s28, 4096 }
  0x17   : > { %p502_p13 = scmp.ne.s32.totalorder %s713_s28, %s501_s5  ;;  %p503_p0 = pneg %p717_p12 }
  0x18   : > { %s506_s8 = scalar_lea.hbm %s878_s0, 16384  ;;  %p507_p3 = scmp.lt.u32.totalorder %s713_s28, %s878_s0 }
  0x19   : > { %p504_p1 = pnand %p503_p0, %p502_p13  ;;  %p508_p4 = scmp.lt.u32.totalorder %s506_s8, %s501_s5 }
  0x1a   : > { %p510_p7 = scmp.lt.u32.totalorder %s501_s5, %s713_s28 }
  0x1b   : > { %p505_p2 = pneg %p504_p1  ;;  %p509_p5 = por %p508_p4, %p507_p3 }
  0x1d   : > { %p511_p8 = por %p510_p7, %p509_p5 }
  0x1f   : > { %p512_p9 = pnand %p511_p8, %p505_p2 }
  0x21   : > { %515 = shalt.err (!%p512_p9)
}
  0x22   : > { %s516_s17 = scalar_lea.vmem %s721_s30, 4096  ;;  %s631_s19 = smov [#allocation2]  }
  0x23   : > { %p517_p13 = scmp.ne.s32.totalorder %s721_s30, %s516_s17  ;;  %s521_s23 = sshll.u32 %s631_s19, 4  ;;  %s522_s23 = int_to_ptr.vmem [resolvable:$false] %s521_s23 }
  0x24   : > { %s523_s24 = scalar_lea.vmem %s522_s23, 8192  ;;  %p524_p10 = scmp.lt.s32.totalorder %s721_s30, %s522_s23 }
  0x25   : > { %p519_p1 = pnand %p517_p13, %p503_p0  ;;  %p525_p3 = scmp.lt.s32.totalorder %s523_s24, %s516_s17 }
  0x27   : > { %p520_p11 = pneg %p519_p1  ;;  %p526_p4 = por %p525_p3, %p524_p10 }
  0x29   : > { %p527_p5 = pnand %p526_p4, %p520_p11 }
  0x2b   : > { %530 = shalt.err (!%p527_p5)
}
  0x2c   : > { %s632_s25 = smov 128   ;;  %s633_s26 = smov 8  }
  0x2d   : > { %457 = dma.hbm_to_vmem [thread:$0]  (!%p717_p12), %s713_s28, 4096, %s721_s30, %s723_s4, %s632_s25, %s632_s25, %s633_s26  }
  0x2e   : > { %p441_p0 = scmp.ge.s32.totalorder %s629_s12, 1  ;;  %p137_p2 = scmp.lt.s32.totalorder %s629_s12, 5 }
  0x30   : > { %p138_p7 = pnand %p441_p0, %p137_p2 }
  0x31   : > { %s754_s27 = sand.u32 (!%p138_p7), 1, %s621_s10  }
  0x32   : > { %141 = sbr.rel (%p138_p7) target bundleno = 170 (0xaa), region = 24  ;;  %s442_s29 = sshll.u32 (!%p138_p7), %s754_s27, 8 }
  0x33   : > { %s144_s5 = scalar_lea.sflag (!%p138_p7), [#allocation3], %s754_s27  ;;  %s758_s6 = scalar_lea.vmem (!%p138_p7), [#allocation2], %s442_s29 }
  0x39   : > { %604 = dma.done.wait (%p694_p6), %s144_s5, 4096  }
  0x3a   : > { %606 = vsyncadd (%p694_p6), %s144_s5, 4294963200  ;;  %v171_v0 = vld [vmem:[%s758_s6] sm:$0xff]  ;;  %v172_v1 = vld [vmem:[%s758_s6 + $0x8] sm:$0xff]  ;;  %s164_s20 = scalar_lea.vmem [#allocation5], %s754_s27  ;;  %s443_s30 = sshll.u32 %s672_s13, 4 }
  0x3b   : > { %v173_v2 = vld [vmem:[%s758_s6 + $0x10] sm:$0xff]  ;;  %v174_v3 = vld [vmem:[%s758_s6 + $0x18] sm:$0xff]  ;;  %v203_v4 = vadd.f32 %v172_v1, %v171_v0  ;;  %v241_v5 = vmul.f32 %v171_v0, %v171_v0  ;;  %v242_v6 = vmul.f32 %v172_v1, %v172_v1  ;;  %v175_v8 = vld [vmem:[%s758_s6 + $0x20] sm:$0xff]  ;;  %s328_s28 = sshll.u32 %s164_s20, 4  ;;  %s170_s3 = scalar_lea.vmem [#allocation6], %s754_s27  ;;  %s801_s28 = int_to_ptr.vmem [resolvable:$true] %s328_s28 }
  0x3c   : > { %v243_v7 = vmul.f32 %v173_v2, %v173_v2  ;;  %v244_v10 = vmul.f32 %v174_v3, %v174_v3  ;;  %v176_v12 = vld [vmem:[%s758_s6 + $0x28] sm:$0xff]  ;;  %v245_v14 = vmul.f32 %v175_v8, %v175_v8  ;;  %v177_v16 = vld [vmem:[%s758_s6 + $0x30] sm:$0xff]  ;;  %v178_v20 = vld [vmem:[%s758_s6 + $0x38] sm:$0xff]  ;;  %s341_s4 = sshll.u32 %s170_s3, 4  ;;  %s806_s14 = scalar_lea.hbm %s879_s1, %s443_s30  ;;  %s808_s4 = int_to_ptr.vmem [resolvable:$true] %s341_s4 }
  0x3d   : > { %v204_v9 = vadd.f32 %v203_v4, %v173_v2  ;;  %v273_v11 = vadd.f32 %v242_v6, %v241_v5  ;;  %v246_v18 = vmul.f32 %v176_v12, %v176_v12  ;;  %v247_v22 = vmul.f32 %v177_v16, %v177_v16  ;;  %v179_v24 = vld [vmem:[%s758_s6 + $0x40] sm:$0xff]  ;;  %v180_v28 = vld [vmem:[%s758_s6 + $0x48] sm:$0xff]  ;;  %v181_v32 = vld [vmem:[%s758_s6 + $0x50] sm:$0xff]  ;;  %s813_s17 = scalar_lea.hbm %s880_s2, %s443_s30  ;;  %s312_s19 = scalar_lea.sflag [#allocation4], %s754_s27 }
  0x3e   : > { %v248_v26 = vmul.f32 %v178_v20, %v178_v20  ;;  %v249_v30 = vmul.f32 %v179_v24, %v179_v24  ;;  %v250_v34 = vmul.f32 %v180_v28, %v180_v28  ;;  %v182_v36 = vld [vmem:[%s758_s6 + $0x58] sm:$0xff]  ;;  %v251_v38 = vmul.f32 %v181_v32, %v181_v32  ;;  %v183_v40 = vld [vmem:[%s758_s6 + $0x60] sm:$0xff]  ;;  %v184_v44 = vld [vmem:[%s758_s6 + $0x68] sm:$0xff]  ;;  %s531_s23 = scalar_lea.vmem %s801_s28, 16  ;;  %p887_p10 = scmp.ne.s32.totalorder %s884_s21, 0 }
  0x3f   : > { %v205_v13 = vadd.f32 %v204_v9, %v174_v3  ;;  %v274_v15 = vadd.f32 %v273_v11, %v243_v7  ;;  %v252_v42 = vmul.f32 %v182_v36, %v182_v36  ;;  %v253_v46 = vmul.f32 %v183_v40, %v183_v40  ;;  %v185_v48 = vld [vmem:[%s758_s6 + $0x70] sm:$0xff]  ;;  %v186_v52 = vld [vmem:[%s758_s6 + $0x78] sm:$0xff]  ;;  %v187_v56 = vld [vmem:[%s758_s6 + $0x80] sm:$0xff]  ;;  %p532_p6 = scmp.ne.s32.totalorder %s801_s28, %s531_s23  ;;  %s634_s24 = smov [#allocation5]  }
  0x40   : > { %v254_v50 = vmul.f32 %v184_v44, %v184_v44  ;;  %v255_v54 = vmul.f32 %v185_v48, %v185_v48  ;;  %v256_v58 = vmul.f32 %v186_v52, %v186_v52  ;;  %v188_v60 = vld [vmem:[%s758_s6 + $0x88] sm:$0xff]  ;;  %v257_v62 = vmul.f32 %v187_v56, %v187_v56  ;;  %v189_v0 = vld [vmem:[%s758_s6 + $0x90] sm:$0xff]  ;;  %v190_v4 = vld [vmem:[%s758_s6 + $0x98] sm:$0xff]  ;;  %s535_s25 = sshll.u32 %s634_s24, 4  ;;  %s536_s25 = int_to_ptr.vmem [resolvable:$false] %s535_s25 }
  0x41   : > { %v206_v17 = vadd.f32 %v205_v13, %v175_v8  ;;  %v275_v19 = vadd.f32 %v274_v15, %v244_v10  ;;  %v258_v2 = vmul.f32 %v188_v60, %v188_v60  ;;  %v259_v6 = vmul.f32 %v189_v0, %v189_v0  ;;  %v191_v8 = vld [vmem:[%s758_s6 + $0xa0] sm:$0xff]  ;;  %p533_p11 = pnand %p532_p6, %p887_p10  ;;  %s537_s26 = scalar_lea.vmem %s536_s25, 32 }
  0x42   : > { %v260_v10 = vmul.f32 %v190_v4, %v190_v4  ;;  %p538_p8 = scmp.lt.s32.totalorder %s801_s28, %s536_s25  ;;  %p539_p9 = scmp.lt.s32.totalorder %s537_s26, %s531_s23 }
  0x43   : > { %v207_v21 = vadd.f32 %v206_v17, %v176_v12  ;;  %v276_v23 = vadd.f32 %v275_v19, %v245_v14  ;;  %v192_v12 = vld [vmem:[%s758_s6 + $0xa8] sm:$0xff]  ;;  %v261_v14 = vmul.f32 %v191_v8, %v191_v8  ;;  %p534_p12 = pneg %p533_p11 }
  0x44   : > { %p540_p13 = por %p539_p9, %p538_p8 }
  0x45   : > { %v208_v25 = vadd.f32 %v207_v21, %v177_v16  ;;  %v277_v27 = vadd.f32 %v276_v23, %v246_v18  ;;  %v193_v16 = vld [vmem:[%s758_s6 + $0xb0] sm:$0xff]  ;;  %v262_v18 = vmul.f32 %v192_v12, %v192_v12 }
  0x46   : > { %p541_p1 = pnand %p540_p13, %p534_p12 }
  0x47   : > { %v209_v29 = vadd.f32 %v208_v25, %v178_v20  ;;  %v278_v31 = vadd.f32 %v277_v27, %v247_v22  ;;  %v194_v20 = vld [vmem:[%s758_s6 + $0xb8] sm:$0xff]  ;;  %v263_v22 = vmul.f32 %v193_v16, %v193_v16 }
  0x49   : > { %v210_v33 = vadd.f32 %v209_v29, %v179_v24  ;;  %v279_v35 = vadd.f32 %v278_v31, %v248_v26  ;;  %v195_v24 = vld [vmem:[%s758_s6 + $0xc0] sm:$0xff]  ;;  %v264_v26 = vmul.f32 %v194_v20, %v194_v20 }
  0x4b   : > { %v211_v37 = vadd.f32 %v210_v33, %v180_v28  ;;  %v280_v39 = vadd.f32 %v279_v35, %v249_v30  ;;  %v196_v28 = vld [vmem:[%s758_s6 + $0xc8] sm:$0xff]  ;;  %v265_v30 = vmul.f32 %v195_v24, %v195_v24 }
  0x4d   : > { %v212_v41 = vadd.f32 %v211_v37, %v181_v32  ;;  %v281_v43 = vadd.f32 %v280_v39, %v250_v34  ;;  %v197_v32 = vld [vmem:[%s758_s6 + $0xd0] sm:$0xff]  ;;  %v266_v34 = vmul.f32 %v196_v28, %v196_v28 }
  0x4f   : > { %v213_v45 = vadd.f32 %v212_v41, %v182_v36  ;;  %v282_v47 = vadd.f32 %v281_v43, %v251_v38  ;;  %v198_v36 = vld [vmem:[%s758_s6 + $0xd8] sm:$0xff]  ;;  %v267_v38 = vmul.f32 %v197_v32, %v197_v32 }
  0x51   : > { %v214_v49 = vadd.f32 %v213_v45, %v183_v40  ;;  %v283_v51 = vadd.f32 %v282_v47, %v252_v42  ;;  %v199_v40 = vld [vmem:[%s758_s6 + $0xe0] sm:$0xff]  ;;  %v268_v42 = vmul.f32 %v198_v36, %v198_v36 }
  0x53   : > { %v215_v53 = vadd.f32 %v214_v49, %v184_v44  ;;  %v284_v55 = vadd.f32 %v283_v51, %v253_v46  ;;  %v200_v44 = vld [vmem:[%s758_s6 + $0xe8] sm:$0xff]  ;;  %v269_v46 = vmul.f32 %v199_v40, %v199_v40 }
  0x55   : > { %v216_v57 = vadd.f32 %v215_v53, %v185_v48  ;;  %v285_v59 = vadd.f32 %v284_v55, %v254_v50  ;;  %v201_v48 = vld [vmem:[%s758_s6 + $0xf0] sm:$0xff]  ;;  %v270_v50 = vmul.f32 %v200_v44, %v200_v44 }
  0x57   : > { %v217_v61 = vadd.f32 %v216_v57, %v186_v52  ;;  %v286_v63 = vadd.f32 %v285_v59, %v255_v54  ;;  %v202_v52 = vld [vmem:[%s758_s6 + $0xf8] sm:$0xff]  ;;  %v271_v54 = vmul.f32 %v201_v48, %v201_v48 }
  0x58   : > { %v272_v57 = vmul.f32 %v202_v52, %v202_v52 }
  0x59   : > { %v218_v1 = vadd.f32 %v217_v61, %v187_v56  ;;  %v287_v3 = vadd.f32 %v286_v63, %v256_v58 }
  0x5b   : > { %v219_v5 = vadd.f32 %v218_v1, %v188_v60  ;;  %v288_v7 = vadd.f32 %v287_v3, %v257_v62 }
  0x5d   : > { %v220_v9 = vadd.f32 %v219_v5, %v189_v0  ;;  %v289_v11 = vadd.f32 %v288_v7, %v258_v2 }
  0x5f   : > { %v221_v13 = vadd.f32 %v220_v9, %v190_v4  ;;  %v290_v15 = vadd.f32 %v289_v11, %v259_v6 }
  0x61   : > { %v222_v17 = vadd.f32 %v221_v13, %v191_v8  ;;  %v291_v19 = vadd.f32 %v290_v15, %v260_v10 }
  0x63   : > { %v223_v21 = vadd.f32 %v222_v17, %v192_v12  ;;  %v292_v23 = vadd.f32 %v291_v19, %v261_v14 }
  0x65   : > { %v224_v25 = vadd.f32 %v223_v21, %v193_v16  ;;  %v293_v27 = vadd.f32 %v292_v23, %v262_v18 }
  0x67   : > { %v225_v29 = vadd.f32 %v224_v25, %v194_v20  ;;  %v294_v31 = vadd.f32 %v293_v27, %v263_v22 }
  0x69   : > { %v226_v33 = vadd.f32 %v225_v29, %v195_v24  ;;  %v295_v35 = vadd.f32 %v294_v31, %v264_v26 }
  0x6b   : > { %v227_v37 = vadd.f32 %v226_v33, %v196_v28  ;;  %v296_v39 = vadd.f32 %v295_v35, %v265_v30 }
  0x6d   : > { %v228_v41 = vadd.f32 %v227_v37, %v197_v32  ;;  %v297_v43 = vadd.f32 %v296_v39, %v266_v34 }
  0x6f   : > { %v229_v45 = vadd.f32 %v228_v41, %v198_v36  ;;  %v298_v47 = vadd.f32 %v297_v43, %v267_v38 }
  0x71   : > { %v230_v49 = vadd.f32 %v229_v45, %v199_v40  ;;  %v299_v51 = vadd.f32 %v298_v47, %v268_v42 }
  0x73   : > { %v231_v53 = vadd.f32 %v230_v49, %v200_v44  ;;  %v300_v55 = vadd.f32 %v299_v51, %v269_v46 }
  0x75   : > { %v232_v56 = vadd.f32 %v231_v53, %v201_v48  ;;  %v301_v58 = vadd.f32 %v300_v55, %v270_v50 }
  0x77   : > { %v233_v59 = vadd.f32 %v232_v56, %v202_v52  ;;  %v302_v60 = vadd.f32 %v301_v58, %v271_v54 }
  0x79   : > { %v234_v61 = vrot.slane %v233_v59, 4  ;;  %v303_v62 = vadd.f32 %v302_v60, %v272_v57 }
  0x7b   : > { %v235_v63 = vadd.f32 %v234_v61, %v233_v59  ;;  %v304_v0 = vrot.slane %v303_v62, 4 }
  0x7d   : > { %v236_v1 = vrot.slane %v235_v63, 2  ;;  %v305_v2 = vadd.f32 %v304_v0, %v303_v62 }
  0x7f   : > { %v237_v3 = vadd.f32 %v236_v1, %v235_v63  ;;  %v306_v4 = vrot.slane %v305_v2, 2 }
  0x81   : > { %v238_v5 = vrot.slane %v237_v3, 1  ;;  %v307_v6 = vadd.f32 %v306_v4, %v305_v2 }
  0x83   : > { %v239_v7 = vadd.f32 %v238_v5, %v237_v3  ;;  %v308_v8 = vrot.slane %v307_v6, 1 }
  0x85   : > { %240 = vst [vmem:[%s164_s20] sm:$0x1] %v239_v7  ;;  %v309_v9 = vadd.f32 %v308_v8, %v307_v6 }
  0x86   : > { %544 = shalt.err (!%p541_p1)
}
  0x87   : > { %s545_s29 = scalar_lea.hbm %s806_s14, 16  ;;  %s549_s20 = scalar_lea.hbm %s879_s1, 64 }
  0x88   : > { %p546_p3 = scmp.ne.s32.totalorder %s806_s14, %s545_s29  ;;  %p550_p0 = scmp.lt.u32.totalorder %s806_s14, %s879_s1 }
  0x89   : > { %p551_p2 = scmp.lt.u32.totalorder %s549_s20, %s545_s29  ;;  %p553_p6 = scmp.lt.u32.totalorder %s545_s29, %s806_s14 }
  0x8a   : > { %p547_p4 = pnand %p546_p3, %p887_p10 }
  0x8b   : > { %p552_p7 = por %p551_p2, %p550_p0 }
  0x8c   : > { %p548_p5 = pneg %p547_p4 }
  0x8d   : > { %p554_p11 = por %p553_p6, %p552_p7 }
  0x8f   : > { %p555_p12 = pnand %p554_p11, %p548_p5 }
  0x91   : > { %558 = shalt.err (!%p555_p12)
}
  0x92   : > { %450 = dma.vmem_to_hbm [thread:$0]  (%p887_p10), %s801_s28, 16, %s806_s14, %s312_s19   ;;  %310 = vst [vmem:[%s170_s3] sm:$0x1] %v309_v9 }
  0x93   : > { %s316_s8 = scalar_lea.sflag [#allocation7], %s754_s27  ;;  %s559_s13 = scalar_lea.vmem %s808_s4, 16 }
  0x94   : > { %p560_p8 = scmp.ne.s32.totalorder %s808_s4, %s559_s13  ;;  %s635_s16 = smov [#allocation6]  }
  0x95   : > { %s563_s23 = sshll.u32 %s635_s16, 4  ;;  %s564_s23 = int_to_ptr.vmem [resolvable:$false] %s563_s23 }
  0x96   : > { %p561_p9 = pnand %p560_p8, %p887_p10  ;;  %s565_s24 = scalar_lea.vmem %s564_s23, 32 }
  0x97   : > { %p566_p1 = scmp.lt.s32.totalorder %s808_s4, %s564_s23  ;;  %p567_p3 = scmp.lt.s32.totalorder %s565_s24, %s559_s13 }
  0x98   : > { %p562_p13 = pneg %p561_p9 }
  0x99   : > { %p568_p4 = por %p567_p3, %p566_p1 }
  0x9b   : > { %p569_p5 = pnand %p568_p4, %p562_p13 }
  0x9d   : > { %572 = shalt.err (!%p569_p5)
}
  0x9e   : > { %s573_s27 = scalar_lea.hbm %s813_s17, 16  ;;  %s577_s14 = scalar_lea.hbm %s880_s2, 64 }
  0x9f   : > { %p574_p0 = scmp.ne.s32.totalorder %s813_s17, %s573_s27  ;;  %p578_p6 = scmp.lt.u32.totalorder %s813_s17, %s880_s2 }
  0xa0   : > { %p579_p11 = scmp.lt.u32.totalorder %s577_s14, %s573_s27  ;;  %p581_p8 = scmp.lt.u32.totalorder %s573_s27, %s813_s17 }
  0xa1   : > { %p575_p2 = pnand %p574_p0, %p887_p10 }
  0xa2   : > { %p580_p12 = por %p579_p11, %p578_p6 }
  0xa3   : > { %p576_p7 = pneg %p575_p2 }
  0xa4   : > { %p582_p9 = por %p581_p8, %p580_p12 }
  0xa6   : > { %p583_p13 = pnand %p582_p9, %p576_p7 }
  0xa8   : > { %586 = shalt.err (!%p583_p13)
}
  0xa9   : > { %451 = dma.vmem_to_hbm [thread:$0]  (%p887_p10), %s808_s4, 16, %s813_s17, %s316_s8  }
  0xaa PF: > { %p466_p1 = scmp.ge.s32.totalorder %s629_s12, 2  ;;  %s353_s26 = sand.u32 1, %s617_s9  }
  0xab   : > { %p888_p3 = scmp.ne.s32.totalorder %s885_s22, 0  ;;  %s354_s29 = scalar_lea.sflag [#allocation4], %s353_s26 }
  0xad   : > { %p459_p4 = pnand %p466_p1, %p888_p3 }
  0xaf   : > { %608 = dma.done.wait (!%p459_p4), %s354_s29, 16  }
  0xb0   : > { %610 = vsyncadd (!%p459_p4), %s354_s29, 4294967280  ;;  %s362_s5 = scalar_lea.sflag [#allocation7], %s353_s26 }
  0xb1   : > { %612 = dma.done.wait (!%p459_p4), %s362_s5, 16  }
  0xb2   : > { %614 = vsyncadd (!%p459_p4), %s362_s5, 4294967280  ;;  %p19_p10 = scmp.ge.s32.totalorder %s676_s15, 6   ;;  %s889_s9 = smov %s621_s10 }
  0xb3   : > { %s890_s10 = smov %s625_s11  ;;  %s891_s11 = smov %s688_s18 }
  0xb4   : > { %s892_s12 = smov %s676_s15  ;;  %21 = sbr.rel (!%p19_p10) target bundleno = 7 (0x7), region = 86 }
  0xbb   :  { %366 = vsyncpa [#allocation3], 1 }
  0xbc   :  { %368 = vsyncpa [#allocation3 + $0x1], 1 }
  0xbd   :  { %369 = vsyncpa [#allocation4], 1 }
  0xbe   :  { %371 = vsyncpa [#allocation4 + $0x1], 1 }
  0xbf   :  { %372 = vsyncpa [#allocation7], 1 }
  0xc0   :  { %374 = vsyncpa [#allocation7 + $0x1], 1 }

</bundles_post_ra>
